<compile_context>
chip_gen: v7x
topology: tpu7x:2x2x1
jax: 0.10.0
libtpu: 0.0.40
codegen_flags: <defaults>
</compile_context>

<pallas_src>
import functools

import jax
import jax.numpy as jnp
from jax import lax
from jax.experimental import pallas as pl
from jax.experimental.pallas import tpu as pltpu


def _round_up(x, m):
    return ((x + m - 1) // m) * m


# --------------------------------------------------------------------------
# shared tail: word + position + token_type (+ zero utterance) -> LayerNorm
# --------------------------------------------------------------------------
def _type_contrib(tt_col, t_ref):
    T = t_ref.shape[0]
    if T == 2:
        r0 = t_ref[pl.ds(0, 1), :].astype(jnp.float32)
        r1 = t_ref[pl.ds(1, 1), :].astype(jnp.float32)
        return jnp.where(tt_col == 0, r0, r1)          # (TM, H)
    acc = jnp.where(tt_col == 0, t_ref[pl.ds(0, 1), :].astype(jnp.float32), 0.0)
    for t in range(1, T):
        acc = acc + jnp.where(tt_col == t, t_ref[pl.ds(t, 1), :].astype(jnp.float32), 0.0)
    return acc


def _sum_and_layernorm(w, pos, tt_col, t_ref, g_ref, b_ref, eps):
    x = w + pos + _type_contrib(tt_col, t_ref)
    # utterance_type_ids is None in the reference forward -> its contribution is exactly zero.
    mean = jnp.mean(x, axis=-1, keepdims=True)
    xc = x - mean
    var = jnp.mean(xc * xc, axis=-1, keepdims=True)
    inv = lax.rsqrt(var + eps)
    # TODO(synk): nn.Dropout is identity in eval mode; training-mode dropout not implemented.
    return xc * inv * g_ref[...].astype(jnp.float32) + b_ref[...].astype(jnp.float32)


# --------------------------------------------------------------------------
# path A: manual, double-buffered HBM row gather (large vocab tables)
# --------------------------------------------------------------------------
def _embed_ln_dma_kernel(ids_ref,            # scalar prefetch: (B*S_pad,) int32 in SMEM
                         w_hbm,              # (V, H) word table, left in HBM (pl.ANY)
                         tt_ref,             # (1, 1, TM, 1) token-type ids block (VMEM)
                         p_ref,              # position rows: (S_pad, H) resident or (TM, H) tile
                         t_ref,              # (T, H) token-type table, VMEM resident
                         g_ref, b_ref,       # (1, H) LayerNorm gamma / beta
                         o_ref,              # (1, TM, H) output block
                         wbuf,               # (2, TM, H) word-row gather scratch (double buffer)
                         wsem,               # (2,) DMA semaphores, one per buffer slot
                         *, tm, eps, pos_is_tile):
    b = pl.program_id(0)
    j = pl.program_id(1)
    n_b = pl.num_programs(0)
    n_j = pl.num_programs(1)
    # slot keyed on the GLOBAL step so cross-batch prefetch stays consistent
    # for any n_j parity.  Requires sequential grid traversal ("arbitrary").
    slot = (b * n_j + j) % 2

    def issue_tile(bb, jj, slot_):
        base = pl.multiple_of(bb * (n_j * tm) + jj * tm, tm)   # flat token offset

        def body(r, carry):
            row = ids_ref[base + r]
            pltpu.make_async_copy(w_hbm.at[row], wbuf.at[slot_, r],
                                  wsem.at[slot_]).start()
            return carry

        lax.fori_loop(0, tm, body, 0, unroll=8)

    # prime only at the very first grid step (not once per batch row)
    @pl.when((b == 0) & (j == 0))
    def _():
        issue_tile(0, 0, 0)

    # prefetch next tile of this batch row
    @pl.when(j + 1 < n_j)
    def _():
        issue_tile(b, j + 1, 1 - slot)

    # prefetch the first tile of the NEXT batch row across the boundary
    @pl.when((j + 1 == n_j) & (b + 1 < n_b))
    def _():
        issue_tile(b + 1, 0, 1 - slot)

    # drain the tm row copies of the current tile (dummy src: same shape/dtype as a row)
    def wait_body(r, carry):
        pltpu.make_async_copy(w_hbm.at[0], wbuf.at[slot, r], wsem.at[slot]).wait()
        return carry

    lax.fori_loop(0, tm, wait_body, 0, unroll=8)

    w = wbuf[slot].astype(jnp.float32)                               # (TM, H)
    if pos_is_tile:
        pos = p_ref[...].astype(jnp.float32)
    else:
        start = pl.multiple_of(j * tm, tm)
        pos = p_ref[pl.ds(start, tm), :].astype(jnp.float32)
    tt_col = tt_ref[0, 0]                                            # (TM, 1) int32
    o_ref[0] = _sum_and_layernorm(w, pos, tt_col, t_ref, g_ref, b_ref, eps).astype(o_ref.dtype)


# --------------------------------------------------------------------------
# path B: VMEM-resident word table, one-hot MXU gather (small vocab tables)
# --------------------------------------------------------------------------
def _embed_ln_resident_kernel(ids_ref,       # (1, 1, TM, 1) int32 ids block (VMEM)
                              tt_ref,        # (1, 1, TM, 1) int32 token-type block
                              w_ref,         # (V, H) word table, VMEM resident
                              p_ref,         # position rows
                              t_ref,         # (T, H)
                              g_ref, b_ref,  # (1, H)
                              o_ref,         # (1, TM, H)
                              *, tm, eps, pos_is_tile):
    j = pl.program_id(1)
    ids_col = ids_ref[0, 0]                                          # (TM, 1) int32
    V = w_ref.shape[0]
    onehot = (lax.broadcasted_iota(jnp.int32, (tm, V), 1) == ids_col).astype(jnp.float32)
    w = jnp.dot(onehot, w_ref[...].astype(jnp.float32),
                preferred_element_type=jnp.float32)                  # (TM, H) gather on MXU
    if pos_is_tile:
        pos = p_ref[...].astype(jnp.float32)
    else:
        start = pl.multiple_of(j * tm, tm)
        pos = p_ref[pl.ds(start, tm), :].astype(jnp.float32)
    tt_col = tt_ref[0, 0]
    o_ref[0] = _sum_and_layernorm(w, pos, tt_col, t_ref, g_ref, b_ref, eps).astype(o_ref.dtype)


# --------------------------------------------------------------------------
# wrapper
# --------------------------------------------------------------------------
def bert_embeddings(input_ids, token_type_ids,
                    word_table, pos_table, type_table,
                    gamma, beta, *,
                    layer_norm_eps=1e-12,
                    token_tile=256,
                    out_dtype=None,
                    force_dma_gather=False):
    B, S = input_ids.shape
    V, H = word_table.shape
    T = type_table.shape[0]
    out_dtype = jnp.dtype(word_table.dtype if out_dtype is None else out_dtype)

    # Token tile: sublane-dense (multiple of 8), capped by the (padded) sequence length.
    tm = token_tile if S >= token_tile else _round_up(S, 8)
    s_pad = _round_up(S, tm)
    n_j = s_pad // tm

    # Ids / token-type ids: clamp (guard against silent OOB DMA on bad ids;
    # NOTE this remaps invalid ids instead of reproducing OOB behaviour) and pad.
    ids = jnp.clip(input_ids.astype(jnp.int32), 0, V - 1)
    tts = jnp.clip(token_type_ids.astype(jnp.int32), 0, T - 1)
    if s_pad != S:
        ids = jnp.pad(ids, ((0, 0), (0, s_pad - S)))
        tts = jnp.pad(tts, ((0, 0), (0, s_pad - S)))
    tt4 = tts.reshape(B, n_j, tm, 1)

    # Only the position rows actually used (arange(S)); padded rows are zero, sliced away.
    pos_used = pos_table[:S]
    if s_pad != S:
        pos_used = jnp.pad(pos_used, ((0, s_pad - S), (0, 0)))

    g2 = gamma.reshape(1, H)
    b2 = beta.reshape(1, H)

    # Position rows: keep VMEM-resident when small, otherwise tile (tm, H) per j
    # so long sequences don't blow v7x's 64 MiB VMEM.
    pos_is_tile = (2 * s_pad * H * pos_used.dtype.itemsize) > (8 * 1024 * 1024)

    # Word table: VMEM-resident one-hot gather when it is genuinely small.
    word_bytes = V * H * word_table.dtype.itemsize
    use_resident = (not force_dma_gather) and (word_bytes <= (4 * 1024 * 1024)) and (V <= 2048)

    tok = B * s_pad
    cost = pl.CostEstimate(
        flops=int(tok * H * 12),
        transcendentals=0,
        bytes_accessed=int(tok * H * (word_table.dtype.itemsize + out_dtype.itemsize)
                           + s_pad * H * pos_used.dtype.itemsize
                           + T * H * type_table.dtype.itemsize
                           + tok * 2 * 4))

    out_shape = jax.ShapeDtypeStruct((B, s_pad, H), out_dtype)

    if use_resident:
        pos_spec = (pl.BlockSpec((tm, H), lambda b, j: (j, 0)) if pos_is_tile
                    else pl.BlockSpec((s_pad, H), lambda b, j: (0, 0)))
        ids4 = ids.reshape(B, n_j, tm, 1)
        grid_spec = pltpu.PrefetchScalarGridSpec(
            num_scalar_prefetch=0,
            grid=(B, n_j),
            in_specs=[
                pl.BlockSpec((1, 1, tm, 1), lambda b, j: (b, j, 0, 0)),   # ids tile
                pl.BlockSpec((1, 1, tm, 1), lambda b, j: (b, j, 0, 0)),   # token-type ids tile
                pl.BlockSpec((V, H), lambda b, j: (0, 0)),                # word table: VMEM resident
                pos_spec,
                pl.BlockSpec((T, H), lambda b, j: (0, 0)),                # type table
                pl.BlockSpec((1, H), lambda b, j: (0, 0)),                # gamma
                pl.BlockSpec((1, H), lambda b, j: (0, 0)),                # beta
            ],
            out_specs=pl.BlockSpec((1, tm, H), lambda b, j: (b, j, 0)),
        )
        out = pl.pallas_call(
            functools.partial(_embed_ln_resident_kernel, tm=tm, eps=layer_norm_eps,
                              pos_is_tile=pos_is_tile),
            grid_spec=grid_spec,
            out_shape=out_shape,
            compiler_params=pltpu.CompilerParams(
                dimension_semantics=("parallel", "parallel"),
                vmem_limit_bytes=64 * 1024 * 1024),
            cost_estimate=cost,
        )(ids4, tt4, word_table, pos_used, type_table, g2, b2)
    else:
        pos_spec = (pl.BlockSpec((tm, H), lambda b, j, ids: (j, 0)) if pos_is_tile
                    else pl.BlockSpec((s_pad, H), lambda b, j, ids: (0, 0)))
        ids_flat = ids.reshape(B * s_pad)                              # -> SMEM scalar prefetch
        grid_spec = pltpu.PrefetchScalarGridSpec(
            num_scalar_prefetch=1,
            grid=(B, n_j),
            in_specs=[
                pl.BlockSpec(memory_space=pl.ANY),                            # word table: HBM
                pl.BlockSpec((1, 1, tm, 1), lambda b, j, ids: (b, j, 0, 0)),  # token-type ids tile
                pos_spec,
                pl.BlockSpec((T, H), lambda b, j, ids: (0, 0)),               # type table
                pl.BlockSpec((1, H), lambda b, j, ids: (0, 0)),               # gamma
                pl.BlockSpec((1, H), lambda b, j, ids: (0, 0)),               # beta
            ],
            out_specs=pl.BlockSpec((1, tm, H), lambda b, j, ids: (b, j, 0)),
            scratch_shapes=[
                pltpu.VMEM((2, tm, H), word_table.dtype),   # double-buffered word-row gather
                pltpu.SemaphoreType.DMA((2,)),              # one DMA semaphore per buffer slot
            ],
        )
        out = pl.pallas_call(
            functools.partial(_embed_ln_dma_kernel, tm=tm, eps=layer_norm_eps,
                              pos_is_tile=pos_is_tile),
            grid_spec=grid_spec,
            out_shape=out_shape,
            compiler_params=pltpu.CompilerParams(
                # cross-batch DMA prefetch assumes sequential grid traversal
                dimension_semantics=("arbitrary", "arbitrary"),
                vmem_limit_bytes=64 * 1024 * 1024),
            cost_estimate=cost,
        )(ids_flat, word_table, tt4, pos_used, type_table, g2, b2)

    return out[:, :S, :]


# --------------------------------------------------------------------------
# reference + self-test
# --------------------------------------------------------------------------
def _reference(input_ids, token_type_ids, word_table, pos_table, type_table,
               gamma, beta, eps=1e-12):
    B, S = input_ids.shape
    x = (jnp.take(word_table, input_ids, axis=0)
         + jnp.take(pos_table, jnp.arange(S), axis=0)[None, :, :]
         + jnp.take(type_table, token_type_ids, axis=0))
    mean = jnp.mean(x, axis=-1, keepdims=True)
    var = jnp.mean((x - mean) ** 2, axis=-1, keepdims=True)
    return (x - mean) * lax.rsqrt(var + eps) * gamma + beta


if __name__ == "__main__":
    # small config consistent with the module
    vocab_size = 64
    hidden_size = 32
    max_position_embeddings = 64
    type_vocab_size = 2
    pad_token_id = 1
    layer_norm_eps = 1e-12

    key = jax.random.PRNGKey(0)
    k_w, k_p, k_t, k_ids, k_tt, k_ids2, k_tt2 = jax.random.split(key, 7)

    word_table = 0.02 * jax.random.normal(k_w, (vocab_size, hidden_size), jnp.float32)
    word_table = word_table.at[pad_token_id].set(0.0)   # nn.Embedding padding_idx row
    pos_table = 0.02 * jax.random.normal(k_p, (max_position_embeddings, hidden_size), jnp.float32)
    type_table = 0.02 * jax.random.normal(k_t, (type_vocab_size, hidden_size), jnp.float32)
    gamma = jnp.ones((hidden_size,), jnp.float32)
    beta = jnp.zeros((hidden_size,), jnp.float32)

    # case 1: small shape, auto path (VMEM-resident one-hot gather for this tiny vocab)
    batch, seq = 2, 8
    input_ids = jax.random.randint(k_ids, (batch, seq), 0, vocab_size, dtype=jnp.int32)
    token_type_ids = jax.random.randint(k_tt, (batch, seq), 0, type_vocab_size, dtype=jnp.int32)

    out_res = bert_embeddings(input_ids, token_type_ids,
                              word_table, pos_table, type_table,
                              gamma, beta, layer_norm_eps=layer_norm_eps)
    out_res = jax.block_until_ready(out_res)
    ref1 = _reference(input_ids, token_type_ids, word_table, pos_table, type_table,
                      gamma, beta, layer_norm_eps)
    assert out_res.shape == (batch, seq, hidden_size)
    # resident path gathers via one-hot MXU matmul at default (bf16-pass) precision
    assert jnp.allclose(out_res, ref1, atol=2e-3, rtol=2e-3), "resident-path mismatch vs reference"

    # case 2: multi-tile + padding + cross-batch prefetch, forced HBM DMA gather path (bit-faithful f32)
    batch2, seq2 = 2, 40
    input_ids2 = jax.random.randint(k_ids2, (batch2, seq2), 0, vocab_size, dtype=jnp.int32)
    token_type_ids2 = jax.random.randint(k_tt2, (batch2, seq2), 0, type_vocab_size, dtype=jnp.int32)

    out_dma = bert_embeddings(input_ids2, token_type_ids2,
                              word_table, pos_table, type_table,
                              gamma, beta, layer_norm_eps=layer_norm_eps,
                              token_tile=16, force_dma_gather=True)
    out_dma = jax.block_until_ready(out_dma)
    ref2 = _reference(input_ids2, token_type_ids2, word_table, pos_table, type_table,
                      gamma, beta, layer_norm_eps)
    assert out_dma.shape == (batch2, seq2, hidden_size)
    assert jnp.allclose(out_dma, ref2, atol=1e-5, rtol=1e-5), "DMA-path mismatch vs reference"

    # case 3: bf16 output smoke test (halves HBM writeback for production pipelines)
    out_bf16 = bert_embeddings(input_ids2, token_type_ids2,
                               word_table, pos_table, type_table,
                               gamma, beta, layer_norm_eps=layer_norm_eps,
                               token_tile=16, force_dma_gather=True,
                               out_dtype=jnp.bfloat16)
    out_bf16 = jax.block_until_ready(out_bf16)
    assert out_bf16.dtype == jnp.bfloat16
    assert jnp.allclose(out_bf16.astype(jnp.float32), ref2, atol=2e-2, rtol=2e-2)

    print("KERNEL_OK")
</pallas_src>

<mosaic_0001>
module attributes {stable_mosaic.version = 11 : i64} {
  func.func @_embed_ln_resident_kernel(%arg0: i32, %arg1: i32, %arg2: memref<1x1x8x1xi32, #tpu.memory_space<vmem>>, %arg3: memref<1x1x8x1xi32, #tpu.memory_space<vmem>>, %arg4: memref<64x32xf32, #tpu.memory_space<vmem>>, %arg5: memref<8x32xf32, #tpu.memory_space<vmem>>, %arg6: memref<2x32xf32, #tpu.memory_space<vmem>>, %arg7: memref<1x32xf32, #tpu.memory_space<vmem>>, %arg8: memref<1x32xf32, #tpu.memory_space<vmem>>, %arg9: memref<1x8x32xf32, #tpu.memory_space<vmem>>) attributes {dimension_semantics = [#tpu.dimension_semantics<parallel>, #tpu.dimension_semantics<parallel>], iteration_bounds = array<i64: 2, 1>, scalar_prefetch = 0 : i64, scratch_operands = 0 : i64, tpu.core_type = #tpu.core_type<tc>, window_params = [{transform_indices = @transform_0, window_bounds = array<i64: 1, 1, 8, 1>}, {transform_indices = @transform_1, window_bounds = array<i64: 1, 1, 8, 1>}, {pipeline_mode = #tpu.pipeline_mode<synchronous>, transform_indices = @transform_2, window_bounds = array<i64: 64, 32>}, {pipeline_mode = #tpu.pipeline_mode<synchronous>, transform_indices = @transform_3, window_bounds = array<i64: 8, 32>}, {pipeline_mode = #tpu.pipeline_mode<synchronous>, transform_indices = @transform_4, window_bounds = array<i64: 2, 32>}, {pipeline_mode = #tpu.pipeline_mode<synchronous>, transform_indices = @transform_5, window_bounds = array<i64: 1, 32>}, {pipeline_mode = #tpu.pipeline_mode<synchronous>, transform_indices = @transform_6, window_bounds = array<i64: 1, 32>}, {transform_indices = @transform_7, window_bounds = array<i64: 1, 8, 32>}]} {
    %c0 = arith.constant 0 : index
    %c0_0 = arith.constant 0 : index
    %c0_1 = arith.constant 0 : index
    %c0_2 = arith.constant 0 : index
    %0 = vector.load %arg2[%c0, %c0_0, %c0_1, %c0_2] : memref<1x1x8x1xi32, #tpu.memory_space<vmem>>, vector<1x1x8x1xi32>
    %1 = vector.shape_cast %0 : vector<1x1x8x1xi32> to vector<8x1xi32>
    %2 = tpu.iota {dimensions = array<i32: 1>} : vector<8x64xi32>
    %3 = vector.broadcast %1 : vector<8x1xi32> to vector<8x64xi32>
    %4 = arith.cmpi eq, %2, %3 : vector<8x64xi32>
    %5 = arith.extui %4 : vector<8x64xi1> to vector<8x64xi32>
    %6 = arith.sitofp %5 : vector<8x64xi32> to vector<8x64xf32>
    %c0_3 = arith.constant 0 : index
    %c0_4 = arith.constant 0 : index
    %7 = vector.load %arg4[%c0_3, %c0_4] : memref<64x32xf32, #tpu.memory_space<vmem>>, vector<64x32xf32>
    %cst = arith.constant dense<0.000000e+00> : vector<8x32xf32>
    %8 = tpu.matmul %6, %7, %cst {dimension_numbers = #tpu.dot_dimension_numbers<[1], [0], [0], [1], [0, 0, 1, 1], [], []>} : vector<8x64xf32>, vector<64x32xf32>, vector<8x32xf32> -> vector<8x32xf32>
    %c8_i32 = arith.constant 8 : i32
    %9 = arith.muli %arg1, %c8_i32 : i32
    %10 = tpu.assume_multiple %9, 8 : i32
    %11 = arith.index_cast %10 : i32 to index
    %c0_5 = arith.constant 0 : index
    %12 = vector.load %arg5[%11, %c0_5] : memref<8x32xf32, #tpu.memory_space<vmem>>, vector<8x32xf32>
    %c0_6 = arith.constant 0 : index
    %c0_7 = arith.constant 0 : index
    %c0_8 = arith.constant 0 : index
    %c0_9 = arith.constant 0 : index
    %13 = vector.load %arg3[%c0_6, %c0_7, %c0_8, %c0_9] : memref<1x1x8x1xi32, #tpu.memory_space<vmem>>, vector<1x1x8x1xi32>
    %14 = vector.shape_cast %13 : vector<1x1x8x1xi32> to vector<8x1xi32>
    %15 = arith.addf %8, %12 : vector<8x32xf32>
    %c0_10 = arith.constant 0 : index
    %c0_11 = arith.constant 0 : index
    %16 = vector.load %arg6[%c0_10, %c0_11] : memref<2x32xf32, #tpu.memory_space<vmem>>, vector<1x32xf32>
    %c1 = arith.constant 1 : index
    %c0_12 = arith.constant 0 : index
    %17 = vector.load %arg6[%c1, %c0_12] : memref<2x32xf32, #tpu.memory_space<vmem>>, vector<1x32xf32>
    %c0_i32 = arith.constant 0 : i32
    %18 = vector.broadcast %c0_i32 : i32 to vector<8x1xi32>
    %19 = arith.cmpi eq, %14, %18 : vector<8x1xi32>
    %20 = vector.shape_cast %19 : vector<8x1xi1> to vector<8x1xi1>
    %21 = vector.broadcast %20 : vector<8x1xi1> to vector<8x32xi1>
    %22 = vector.shape_cast %16 : vector<1x32xf32> to vector<1x32xf32>
    %23 = vector.broadcast %22 : vector<1x32xf32> to vector<8x32xf32>
    %24 = vector.shape_cast %17 : vector<1x32xf32> to vector<1x32xf32>
    %25 = vector.broadcast %24 : vector<1x32xf32> to vector<8x32xf32>
    %26 = arith.select %21, %23, %25 : vector<8x32xi1>, vector<8x32xf32>
    %27 = arith.addf %15, %26 : vector<8x32xf32>
    %cst_13 = arith.constant dense<0.000000e+00> : vector<8xf32>
    %28 = vector.multi_reduction <add>, %27, %cst_13 [1] : vector<8x32xf32> to vector<8xf32>
    %29 = vector.shape_cast %28 : vector<8xf32> to vector<8x1xf32>
    %cst_14 = arith.constant 3.200000e+01 : f32
    %30 = vector.broadcast %cst_14 : f32 to vector<8x1xf32>
    %31 = arith.divf %29, %30 : vector<8x1xf32>
    %32 = vector.broadcast %31 : vector<8x1xf32> to vector<8x32xf32>
    %33 = arith.subf %27, %32 : vector<8x32xf32>
    %34 = arith.mulf %33, %33 : vector<8x32xf32>
    %cst_15 = arith.constant dense<0.000000e+00> : vector<8xf32>
    %35 = vector.multi_reduction <add>, %34, %cst_15 [1] : vector<8x32xf32> to vector<8xf32>
    %36 = vector.shape_cast %35 : vector<8xf32> to vector<8x1xf32>
    %cst_16 = arith.constant 3.200000e+01 : f32
    %37 = vector.broadcast %cst_16 : f32 to vector<8x1xf32>
    %38 = arith.divf %36, %37 : vector<8x1xf32>
    %cst_17 = arith.constant 9.99999996E-13 : f32
    %39 = vector.broadcast %cst_17 : f32 to vector<8x1xf32>
    %40 = arith.addf %38, %39 : vector<8x1xf32>
    %41 = math.rsqrt %40 : vector<8x1xf32>
    %42 = vector.broadcast %41 : vector<8x1xf32> to vector<8x32xf32>
    %43 = arith.mulf %33, %42 : vector<8x32xf32>
    %c0_18 = arith.constant 0 : index
    %c0_19 = arith.constant 0 : index
    %44 = vector.load %arg7[%c0_18, %c0_19] : memref<1x32xf32, #tpu.memory_space<vmem>>, vector<1x32xf32>
    %45 = vector.broadcast %44 : vector<1x32xf32> to vector<8x32xf32>
    %46 = arith.mulf %43, %45 : vector<8x32xf32>
    %c0_20 = arith.constant 0 : index
    %c0_21 = arith.constant 0 : index
    %47 = vector.load %arg8[%c0_20, %c0_21] : memref<1x32xf32, #tpu.memory_space<vmem>>, vector<1x32xf32>
    %48 = vector.broadcast %47 : vector<1x32xf32> to vector<8x32xf32>
    %49 = arith.addf %46, %48 : vector<8x32xf32>
    %c0_22 = arith.constant 0 : index
    %c0_23 = arith.constant 0 : index
    %c0_24 = arith.constant 0 : index
    %50 = vector.load %arg9[%c0_22, %c0_23, %c0_24] : memref<1x8x32xf32, #tpu.memory_space<vmem>>, vector<1x8x32xf32>
    %51 = vector.shape_cast %50 : vector<1x8x32xf32> to vector<8x32xf32>
    %52 = vector.shape_cast %49 : vector<8x32xf32> to vector<1x8x32xf32>
    tpu.vector_store %arg9[%c0_22, %c0_23, %c0_24], %52 {strides = array<i32>} : memref<1x8x32xf32, #tpu.memory_space<vmem>>, vector<1x8x32xf32>,
    return
  }
  func.func @transform_0(%arg0: i32, %arg1: i32) -> (i32, i32, i32, i32) {
    %c0_i32 = arith.constant 0 : i32
    %c0_i32_0 = arith.constant 0 : i32
    %c0_i32_1 = arith.constant 0 : i32
    return %arg0, %arg1, %c0_i32, %c0_i32_0 : i32, i32, i32, i32
  }
  func.func @transform_1(%arg0: i32, %arg1: i32) -> (i32, i32, i32, i32) {
    %c0_i32 = arith.constant 0 : i32
    %c0_i32_0 = arith.constant 0 : i32
    %c0_i32_1 = arith.constant 0 : i32
    return %arg0, %arg1, %c0_i32, %c0_i32_0 : i32, i32, i32, i32
  }
  func.func @transform_2(%arg0: i32, %arg1: i32) -> (i32, i32) {
    %c0_i32 = arith.constant 0 : i32
    %c0_i32_0 = arith.constant 0 : i32
    %c0_i32_1 = arith.constant 0 : i32
    return %c0_i32, %c0_i32_0 : i32, i32
  }
  func.func @transform_3(%arg0: i32, %arg1: i32) -> (i32, i32) {
    %c0_i32 = arith.constant 0 : i32
    %c0_i32_0 = arith.constant 0 : i32
    %c0_i32_1 = arith.constant 0 : i32
    return %c0_i32, %c0_i32_0 : i32, i32
  }
  func.func @transform_4(%arg0: i32, %arg1: i32) -> (i32, i32) {
    %c0_i32 = arith.constant 0 : i32
    %c0_i32_0 = arith.constant 0 : i32
    %c0_i32_1 = arith.constant 0 : i32
    return %c0_i32, %c0_i32_0 : i32, i32
  }
  func.func @transform_5(%arg0: i32, %arg1: i32) -> (i32, i32) {
    %c0_i32 = arith.constant 0 : i32
    %c0_i32_0 = arith.constant 0 : i32
    %c0_i32_1 = arith.constant 0 : i32
    return %c0_i32, %c0_i32_0 : i32, i32
  }
  func.func @transform_6(%arg0: i32, %arg1: i32) -> (i32, i32) {
    %c0_i32 = arith.constant 0 : i32
    %c0_i32_0 = arith.constant 0 : i32
    %c0_i32_1 = arith.constant 0 : i32
    return %c0_i32, %c0_i32_0 : i32, i32
  }
  func.func @transform_7(%arg0: i32, %arg1: i32) -> (i32, i32, i32) {
    %c0_i32 = arith.constant 0 : i32
    %c0_i32_0 = arith.constant 0 : i32
    return %arg0, %arg1, %c0_i32 : i32, i32, i32
  }
}

</mosaic_0001>

<bundles_post_ra>
// kernel: tpu_custom_call.1
= control target key start
LH: loop header
LB: loop body
LE: loop exit
PB: predicated region body
PF: predicated region fallthrough
CT: control target
= control target key end

     0   :  { %s1638_s0 = inlined_call_operand.hbm [shape: s32[2,1,8,1], index: 0, kind: input, shape index: {}]   ;;  %s1639_s1 = inlined_call_operand.hbm [shape: s32[2,1,8,1], index: 1, kind: input, shape index: {}]   ;;  %s1640_s2 = inlined_call_operand.hbm [shape: f32[64,32], index: 2, kind: input, shape index: {}]   ;;  %s1641_s3 = inlined_call_operand.hbm [shape: f32[8,32], index: 3, kind: input, shape index: {}]   ;;  %s1642_s4 = inlined_call_operand.hbm [shape: f32[2,32], index: 4, kind: input, shape index: {}]   ;;  %s1643_s5 = inlined_call_operand.hbm [shape: f32[1,32], index: 5, kind: input, shape index: {}]   ;;  %s1644_s6 = inlined_call_operand.hbm [shape: f32[1,32], index: 6, kind: input, shape index: {}]   ;;  %s1645_s7 = inlined_call_operand.hbm [shape: f32[2,8,32], index: 7, kind: output, shape index: {}]  }
   0x1   :  { %1651 = sst [smem:[#allocation21_spill]] %s1640_s2 }
   0x2   :  { %1652 = sst [smem:[#allocation22_spill]] %s1641_s3 }
   0x3   :  { %1653 = sst [smem:[#allocation23_spill]] %s1642_s4 }
   0x4   :  { %1654 = sst [smem:[#allocation24_spill]] %s1643_s5 }
   0x5   :  { %1655 = sst [smem:[#allocation25_spill]] %s1644_s6 }
   0x6   :  { %1656 = sst [smem:[#allocation26_spill]] %s1645_s7 }
   0x7   :  { %12 = vsyncpa [#allocation3], 0 }
   0x8   :  { %14 = vsyncpa [#allocation3 + $0x1], 0 }
   0x9   :  { %15 = vsyncpa [#allocation6], 0 }
   0xa   :  { %17 = vsyncpa [#allocation6 + $0x1], 0 }
   0xb   :  { %18 = vsyncpa [#allocation9], 0 }
   0xc   :  { %19 = vsyncpa [#allocation12], 0 }
   0xd   :  { %20 = vsyncpa [#allocation4], 0 }
   0xe   :  { %22 = vsyncpa [#allocation4 + $0x1], 0  ;;  %s1281_s24 = smov 0   ;;  %s1283_s25 = smov 0  }
   0xf   :  { %s1285_s26 = smov 0   ;;  %s1287_s27 = smov 0  }
  0x10   :  { %s1289_s28 = smov 0   ;;  %s1291_s29 = smov 0  }
  0x11 LB: > { %s1312_s30 = sadd.s32 4294967295, %s1225_s29   ;;  %p730_p0 = scmp.ge.s32.totalorder %s1225_s29, 1  ;;  %s1225_s29 = sphi %s1291_s29, %s28_s29   ;;  %s1221_s28 = sphi %s1289_s28, %s1687_s28   ;;  %s1217_s27 = sphi %s1287_s27, %s1686_s27   ;;  %s1213_s26 = sphi %s1285_s26, %s1685_s26   ;;  %s1209_s25 = sphi %s1283_s25, %s1684_s25   ;;  %s1205_s24 = sphi %s1281_s24, %s1683_s24  }
  0x12   : > { %p1647_p1 = scmp.eq.s32.totalorder %s1312_s30, 0  ;;  %p234_p2 = scmp.lt.s32.totalorder %s1225_s29, 3 }
  0x13   : > { %s1227_s9 = smov [#allocation7]   ;;  %s1228_s12 = smov [#allocation8]  }
  0x14   : > { %p1317_p3 = pnand %p730_p0, %p234_p2  ;;  %s246_s10 = sshll.u32 %s1227_s9, 4  ;;  %s1321_s10 = int_to_ptr.vmem [resolvable:$true] %s246_s10 }
  0x15   : > { %s260_s13 = sshll.u32 %s1228_s12, 4  ;;  %s1229_s14 = smov [#allocation11]   ;;  %s1332_s13 = int_to_ptr.vmem [resolvable:$true] %s260_s13 }
  0x16   : > { %s1657_s8 = scalar_select %p1317_p3, 1, 0 }
  0x17   : > { %p826_p4 = pneg %p1317_p3  ;;  %s1334_s15 = sshll.u32 %s1229_s14, 4  ;;  %s283_s15 = int_to_ptr.vmem [resolvable:$true] %s1334_s15 }
  0x18   : > { %s1659_s2 = sld [smem:[#allocation21_spill]] }
  0x19   : > { %p1328_p6 = pnand %p826_p4, %p1647_p1 }
  0x1b   : > { %p1344_p8 = pneg %p1328_p6 }
  0x1e   : > { %s927_s18 = scalar_lea.hbm %s1659_s2, 1024 }
  0x1f   : > { %p928_p7 = scmp.ne.s32.totalorder %s1659_s2, %s927_s18  ;;  %p934_p11 = scmp.lt.u32.totalorder %s927_s18, %s1659_s2 }
  0x21   : > { %p930_p9 = pnand %p1344_p8, %p928_p7 }
  0x23   : > { %p931_p10 = pneg %p930_p9 }
  0x25   : > { %p936_p12 = pnand %p934_p11, %p931_p10 }
  0x27   : > { %939 = shalt.err (!%p936_p12)
}
  0x28   : > { %s940_s9 = scalar_lea.vmem %s1321_s10, 1024  ;;  %p948_p4 = scmp.lt.s32.totalorder %s1321_s10, %s1321_s10 }
  0x29   : > { %p941_p13 = scmp.ne.s32.totalorder %s1321_s10, %s940_s9  ;;  %p949_p5 = scmp.lt.s32.totalorder %s940_s9, %s940_s9 }
  0x2b   : > { %p943_p0 = pnand %p941_p13, %p1344_p8  ;;  %p950_p7 = por %p949_p5, %p948_p4 }
  0x2d   : > { %p944_p2 = pneg %p943_p0 }
  0x2f   : > { %p951_p9 = pnand %p950_p7, %p944_p2 }
  0x31   : > { %954 = shalt.err (!%p951_p9)
}
  0x32   : > { %s1230_s12 = smov 128   ;;  %s1231_s14 = smov 8  }
  0x33   : > { %829 = dma.hbm_to_vmem [thread:$0]  (!%p1328_p6), %s1659_s2, 1024, %s1321_s10, [#allocation6], %s1230_s12, %s1230_s12, %s1231_s14  }
  0x34   : > { %s1661_s3 = sld [smem:[#allocation22_spill]] }
  0x3a   : > { %s955_s20 = scalar_lea.hbm %s1661_s3, 128 }
  0x3b   : > { %p956_p5 = scmp.ne.s32.totalorder %s1661_s3, %s955_s20  ;;  %p962_p12 = scmp.lt.u32.totalorder %s955_s20, %s1661_s3 }
  0x3d   : > { %p958_p10 = pnand %p956_p5, %p1344_p8 }
  0x3f   : > { %p959_p11 = pneg %p958_p10 }
  0x41   : > { %p964_p13 = pnand %p962_p12, %p959_p11 }
  0x43   : > { %967 = shalt.err (!%p964_p13)
}
  0x44   : > { %s968_s10 = scalar_lea.vmem %s1332_s13, 128  ;;  %p976_p7 = scmp.lt.s32.totalorder %s1332_s13, %s1332_s13 }
  0x45   : > { %p969_p0 = scmp.ne.s32.totalorder %s1332_s13, %s968_s10  ;;  %p977_p9 = scmp.lt.s32.totalorder %s968_s10, %s968_s10 }
  0x47   : > { %p971_p2 = pnand %p969_p0, %p1344_p8  ;;  %p978_p5 = por %p977_p9, %p976_p7 }
  0x49   : > { %p972_p4 = pneg %p971_p2 }
  0x4b   : > { %p979_p10 = pnand %p978_p5, %p972_p4 }
  0x4d   : > { %982 = shalt.err (!%p979_p10)
}
  0x4e   : > { %832 = dma.hbm_to_vmem [thread:$0]  (!%p1328_p6), %s1661_s3, 128, %s1332_s13, [#allocation9]  }
  0x4f   : > { %s1662_s5 = sld [smem:[#allocation24_spill]] }
  0x55   : > { %s983_s17 = scalar_lea.hbm %s1662_s5, 16 }
  0x56   : > { %p984_p11 = scmp.ne.s32.totalorder %s1662_s5, %s983_s17  ;;  %p990_p0 = scmp.lt.u32.totalorder %s983_s17, %s1662_s5 }
  0x58   : > { %p986_p12 = pnand %p984_p11, %p1344_p8 }
  0x5a   : > { %p987_p13 = pneg %p986_p12 }
  0x5c   : > { %p992_p2 = pnand %p990_p0, %p987_p13 }
  0x5e   : > { %995 = shalt.err (!%p992_p2)
}
  0x5f   : > { %s996_s23 = scalar_lea.vmem %s283_s15, 16  ;;  %s1003_s13 = scalar_lea.vmem %s283_s15, 32 }
  0x60   : > { %p997_p4 = scmp.ne.s32.totalorder %s283_s15, %s996_s23  ;;  %p1004_p5 = scmp.lt.s32.totalorder %s283_s15, %s283_s15 }
  0x61   : > { %p1005_p10 = scmp.lt.s32.totalorder %s1003_s13, %s996_s23 }
  0x62   : > { %p999_p7 = pnand %p997_p4, %p1344_p8 }
  0x63   : > { %p1006_p1 = por %p1005_p10, %p1004_p5 }
  0x64   : > { %p1000_p9 = pneg %p999_p7 }
  0x66   : > { %p1007_p3 = pnand %p1006_p1, %p1000_p9 }
  0x68   : > { %1010 = shalt.err (!%p1007_p3)
}
  0x69   : > { %838 = dma.hbm_to_vmem [thread:$0]  (!%p1328_p6), %s1662_s5, 16, %s283_s15, [#allocation12]  }
  0x6a   : > { %s1232_s7 = smov [#allocation10]   ;;  %s1233_s14 = smov [#allocation13]  }
  0x6b   : > { %s271_s12 = sshll.u32 %s1232_s7, 4  ;;  %s293_s16 = sshll.u32 %s1233_s14, 4  ;;  %s272_s12 = int_to_ptr.vmem [resolvable:$true] %s271_s12  ;;  %s294_s16 = int_to_ptr.vmem [resolvable:$true] %s293_s16 }
  0x6c   : > { %s1663_s4 = sld [smem:[#allocation23_spill]] }
  0x72   : > { %s1011_s19 = scalar_lea.hbm %s1663_s4, 32 }
  0x73   : > { %p1012_p1 = scmp.ne.s32.totalorder %s1663_s4, %s1011_s19  ;;  %p1018_p12 = scmp.lt.u32.totalorder %s1011_s19, %s1663_s4 }
  0x75   : > { %p1014_p3 = pnand %p1012_p1, %p1344_p8 }
  0x77   : > { %p1015_p11 = pneg %p1014_p3 }
  0x79   : > { %p1020_p13 = pnand %p1018_p12, %p1015_p11 }
  0x7b   : > { %1023 = shalt.err (!%p1020_p13)
}
  0x7c   : > { %s1024_s15 = scalar_lea.vmem %s272_s12, 32  ;;  %p1032_p7 = scmp.lt.s32.totalorder %s272_s12, %s272_s12 }
  0x7d   : > { %p1025_p0 = scmp.ne.s32.totalorder %s272_s12, %s1024_s15  ;;  %p1033_p9 = scmp.lt.s32.totalorder %s1024_s15, %s1024_s15 }
  0x7f   : > { %p1027_p2 = pnand %p1025_p0, %p1344_p8  ;;  %p1034_p5 = por %p1033_p9, %p1032_p7 }
  0x81   : > { %p1028_p4 = pneg %p1027_p2 }
  0x83   : > { %p1035_p10 = pnand %p1034_p5, %p1028_p4 }
  0x85   : > { %1038 = shalt.err (!%p1035_p10)
}
  0x86   : > { %835 = dma.hbm_to_vmem [thread:$0]  (!%p1328_p6), %s1663_s4, 32, %s272_s12, [#allocation9]  }
  0x87   : > { %s1664_s6 = sld [smem:[#allocation25_spill]] }
  0x8d   : > { %s1039_s17 = scalar_lea.hbm %s1664_s6, 16 }
  0x8e   : > { %p1040_p1 = scmp.ne.s32.totalorder %s1664_s6, %s1039_s17  ;;  %p1046_p12 = scmp.lt.u32.totalorder %s1039_s17, %s1664_s6 }
  0x90   : > { %p1042_p3 = pnand %p1040_p1, %p1344_p8 }
  0x92   : > { %p1043_p11 = pneg %p1042_p3 }
  0x94   : > { %p1048_p13 = pnand %p1046_p12, %p1043_p11 }
  0x96   : > { %1051 = shalt.err (!%p1048_p13)
}
  0x97   : > { %s1052_s23 = scalar_lea.vmem %s294_s16, 16  ;;  %s1059_s12 = scalar_lea.vmem %s294_s16, 32 }
  0x98   : > { %p1053_p0 = scmp.ne.s32.totalorder %s294_s16, %s1052_s23  ;;  %p1060_p7 = scmp.lt.s32.totalorder %s294_s16, %s294_s16 }
  0x99   : > { %p1061_p9 = scmp.lt.s32.totalorder %s1059_s12, %s1052_s23 }
  0x9a   : > { %p1055_p2 = pnand %p1053_p0, %p1344_p8 }
  0x9b   : > { %p1062_p5 = por %p1061_p9, %p1060_p7 }
  0x9c   : > { %p1056_p4 = pneg %p1055_p2 }
  0x9e   : > { %p1063_p10 = pnand %p1062_p5, %p1056_p4 }
  0xa0   : > { %1066 = shalt.err (!%p1063_p10)
}
  0xa1   : > { %841 = dma.hbm_to_vmem [thread:$0]  (!%p1328_p6), %s1664_s6, 16, %s294_s16, [#allocation12]  }
  0xa2   : > { %s729_s21 = sadd.s32 4294967294, %s1225_s29   ;;  %s40_s9 = sadd.s32 1, %s1221_s28 }
  0xa3   : > { %s49_s11 = sadd.s32 1, %s1213_s26  ;;  %p42_p8 = scmp.ge.s32.totalorder %s40_s9, 2 }
  0xa4   : > { %p56_p1 = scmp.ne.s32.totalorder %s1213_s26, %s1209_s25  ;;  %p57_p3 = scmp.eq.s32.totalorder %s1225_s29, 0 }
  0xa5   : > { %p62_p11 = scmp.ne.s32.totalorder %s1209_s25, %s1205_s24  ;;  %s1689_s9 = smov (%p42_p8, %s40_s9), 0 }
  0xa6   : > { %p1453_p12 = por %p57_p3, %p56_p1  ;;  %p1666_p13 = scmp.eq.s32.totalorder %s1312_s30, 0 }
  0xa7   : > { %s44_s7 = ssub.s32 %s1221_s28, %s1689_s9  ;;  %p221_p0 = scmp.eq.s32.totalorder %s1312_s30, 1 }
  0xa8   : > { %p1459_p6 = por %p1666_p13, %p62_p11  ;;  %p47_p2 = scmp.eq.s32.totalorder %s44_s7, 0 }
  0xa9   : > { %p227_p4 = scmp.eq.s32.totalorder %s729_s21, 1  ;;  %p1466_p7 = por %p221_p0, %p56_p1 }
  0xaa   : > { %s1667_s16 = scalar_select %p1459_p6, 1, 0 }
  0xab   : > { %s1668_s14 = scalar_select %p1466_p7, 1, 0 }
  0xac   : > { %p858_p9 = scmp.lt.s32.totalorder %s1225_s29, 2  ;;  %p1474_p5 = por %p227_p4, %p62_p11 }
  0xad   : > { %s1472_s17 = scalar_select %p47_p2, %s1213_s26, %s49_s11  }
  0xae   : > { %s1669_s18 = scalar_select %p1474_p5, 1, 0 }
  0xaf   : > { %s304_s19 = sand.u32 1, %s1213_s26   ;;  %s738_s22 = sshll.u32 %s1221_s28, 7 }
  0xb0   : > { %s1479_s20 = sshll.u32 %s304_s19, 3  ;;  %s1485_s13 = scalar_lea.hbm %s1638_s0, %s738_s22 }
  0xb1   : > { %s308_s15 = scalar_lea.vmem [#allocation2], %s1479_s20  ;;  %p1492_p10 = pnand %p858_p9, %p1453_p12 }
  0xb2   : > { %s316_s21 = sshll.u32 %s308_s15, 4  ;;  %s1499_s23 = scalar_lea.hbm %s1639_s1, %s738_s22  ;;  %s1488_s21 = int_to_ptr.vmem [resolvable:$true] %s316_s21 }
  0xb3   : > { %s323_s12 = sand.u32 1, %s1225_s29   ;;  %s305_s3 = scalar_lea.sflag [#allocation3], %s304_s19 }
  0xb4   : > { %s1067_s4 = scalar_lea.hbm %s1485_s13, 128  ;;  %p1069_p1 = pneg %p1492_p10 }
  0xb5   : > { %p1068_p8 = scmp.ne.s32.totalorder %s1485_s13, %s1067_s4  ;;  %s1072_s5 = scalar_lea.hbm %s1638_s0, 256 }
  0xb6   : > { %p1073_p12 = scmp.lt.u32.totalorder %s1485_s13, %s1638_s0  ;;  %p1074_p13 = scmp.lt.u32.totalorder %s1072_s5, %s1067_s4 }
  0xb7   : > { %p1070_p3 = pnand %p1069_p1, %p1068_p8  ;;  %p1076_p2 = scmp.lt.u32.totalorder %s1067_s4, %s1485_s13 }
  0xb8   : > { %p1075_p0 = por %p1074_p13, %p1073_p12 }
  0xb9   : > { %p1071_p11 = pneg %p1070_p3 }
  0xba   : > { %p1077_p4 = por %p1076_p2, %p1075_p0 }
  0xbc   : > { %p1078_p9 = pnand %p1077_p4, %p1071_p11 }
  0xbe   : > { %1081 = shalt.err (!%p1078_p9)
}
  0xbf   : > { %s1082_s19 = scalar_lea.vmem %s1488_s21, 128  ;;  %s1234_s22 = smov [#allocation2]  }
  0xc0   : > { %p1083_p8 = scmp.ne.s32.totalorder %s1488_s21, %s1082_s19  ;;  %s1087_s7 = sshll.u32 %s1234_s22, 4  ;;  %s1088_s7 = int_to_ptr.vmem [resolvable:$false] %s1087_s7 }
  0xc1   : > { %s1089_s6 = scalar_lea.vmem %s1088_s7, 256  ;;  %p1090_p7 = scmp.lt.s32.totalorder %s1488_s21, %s1088_s7 }
  0xc2   : > { %p1085_p3 = pnand %p1083_p8, %p1069_p1  ;;  %p1091_p12 = scmp.lt.s32.totalorder %s1089_s6, %s1082_s19 }
  0xc4   : > { %p1086_p5 = pneg %p1085_p3  ;;  %p1092_p13 = por %p1091_p12, %p1090_p7 }
  0xc6   : > { %p1093_p0 = pnand %p1092_p13, %p1086_p5 }
  0xc8   : > { %1096 = shalt.err (!%p1093_p0)
}
  0xc9   : > { %845 = dma.hbm_to_vmem [thread:$0]  (!%p1492_p10), %s1485_s13, 128, %s1488_s21, %s305_s3  }
  0xca   : > { %s327_s4 = scalar_lea.vmem [#allocation5], %s1479_s20  ;;  %s324_s10 = scalar_lea.sflag [#allocation6], %s323_s12 }
  0xcb   : > { %s335_s5 = sshll.u32 %s327_s4, 4  ;;  %s1097_s15 = scalar_lea.hbm %s1499_s23, 128  ;;  %s336_s5 = int_to_ptr.vmem [resolvable:$true] %s335_s5 }
  0xcc   : > { %p1098_p7 = scmp.ne.s32.totalorder %s1499_s23, %s1097_s15  ;;  %s1102_s22 = scalar_lea.hbm %s1639_s1, 256 }
  0xcd   : > { %p1103_p2 = scmp.lt.u32.totalorder %s1499_s23, %s1639_s1  ;;  %p1104_p4 = scmp.lt.u32.totalorder %s1102_s22, %s1097_s15 }
  0xce   : > { %p1100_p5 = pnand %p1098_p7, %p1069_p1  ;;  %p1106_p8 = scmp.lt.u32.totalorder %s1097_s15, %s1499_s23 }
  0xcf   : > { %p1105_p9 = por %p1104_p4, %p1103_p2 }
  0xd0   : > { %p1101_p11 = pneg %p1100_p5 }
  0xd1   : > { %p1107_p3 = por %p1106_p8, %p1105_p9 }
  0xd3   : > { %p1108_p12 = pnand %p1107_p3, %p1101_p11 }
  0xd5   : > { %1111 = shalt.err (!%p1108_p12)
}
  0xd6   : > { %s1112_s3 = scalar_lea.vmem %s336_s5, 128  ;;  %s1235_s20 = smov [#allocation5]  }
  0xd7   : > { %p1113_p13 = scmp.ne.s32.totalorder %s336_s5, %s1112_s3  ;;  %s1117_s13 = sshll.u32 %s1235_s20, 4  ;;  %s1118_s13 = int_to_ptr.vmem [resolvable:$false] %s1117_s13 }
  0xd8   : > { %s1119_s21 = scalar_lea.vmem %s1118_s13, 256  ;;  %p1120_p5 = scmp.lt.s32.totalorder %s336_s5, %s1118_s13 }
  0xd9   : > { %p1115_p0 = pnand %p1113_p13, %p1069_p1  ;;  %p1121_p6 = scmp.lt.s32.totalorder %s1119_s21, %s1112_s3 }
  0xdb   : > { %p1116_p7 = pneg %p1115_p0  ;;  %p1122_p2 = por %p1121_p6, %p1120_p5 }
  0xdd   : > { %p1123_p4 = pnand %p1122_p2, %p1116_p7 }
  0xdf   : > { %1126 = shalt.err (!%p1123_p4)
}
  0xe0   : > { %848 = dma.hbm_to_vmem [thread:$0]  (!%p1492_p10), %s1499_s23, 128, %s336_s5, %s324_s10  }
  0xe1   : > { %p1671_p11 = scmp.ne.s32.totalorder %s1657_s8, 0 }
  0xe2   : > { %s1552_s12 = sand.u32 (!%p1671_p11), 1, %s1209_s25   ;;  %p1672_p6 = scmp.ne.s32.totalorder (!%p1671_p11), %s1667_s16, 0 }
  0xe3   : > { %344 = sbr.rel (%p1671_p11) target bundleno = 923 (0x39b), region = 48  ;;  %s1555_s4 = sshll.u32 (!%p1671_p11), %s1552_s12, 3 }
  0xe4   : > { %s347_s15 = scalar_lea.sflag (!%p1671_p11), [#allocation3], %s1552_s12  ;;  %s350_s2 = scalar_lea.vmem (!%p1671_p11), [#allocation2], %s1555_s4 }
  0xea   : > { %1180 = dma.done.wait (%p1672_p6), %s347_s15, 128  }
  0xeb   : > { %1182 = vsyncadd (%p1672_p6), %s347_s15, 4294967168  ;;  %s355_s8 = sand.u32 1, %s1312_s30   ;;  %s359_s23 = scalar_lea.vmem [#allocation5], %s1555_s4 }
  0xec   : > { %s356_s11 = scalar_lea.sflag [#allocation6], %s355_s8 }
  0xed   : > { %1184 = dma.done.wait (%p1672_p6), %s356_s11, 128  }
  0xee   : > { %1186 = vsyncadd (%p1672_p6), %s356_s11, 4294967168  ;;  %p1673_p10 = scmp.eq.s32.totalorder %s1312_s30, 0 }
  0xf0   : > { %1188 = dma.done.wait (%p1673_p10), [#allocation6], 1024   ;;  %p1674_p1 = pmov %p1673_p10 }
  0xf2   : > { %1190 = vsyncadd (%p1674_p1), [#allocation6], 4294966272  ;;  %p1675_p9 = pmov %p1674_p1 }
  0xf3   : > { %p1676_p8 = pmov %p1674_p1 }
  0xf4   : > { %1192 = dma.done.wait (%p1675_p9), [#allocation9], 160  }
  0xf5   : > { %1194 = vsyncadd (%p1676_p8), [#allocation9], 4294967136  ;;  %p1677_p3 = pmov %p1674_p1 }
  0xf6   : > { %p1678_p12 = pmov %p1674_p1 }
  0xf7   : > { %1196 = dma.done.wait (%p1677_p3), [#allocation12], 32  }
  0xf8   : > { %1198 = vsyncadd (%p1678_p12), [#allocation12], 4294967264  ;;  %v1236_v0 = vmov 0   ;;  %v1237_v1 = vmov 0.0|0.0   ;;  %v435_v2 = vld [vmem:[%s359_s23] sm:$0xff]  ;;  %v415_v3 = vld [vmem:[%s350_s2] sm:$0xff]  ;;  %v416_v18 = vlaneseq }
  0xf9   : > { %924 = vset.pattern.permute.xlu0 %v1236_v0  ;;  %788 = vmatprep.subr.bf16.mxu0 %v1237_v1  ;;  %v424_v4 = vld [vmem:[#allocation7] sm:$0xff]  ;;  %vm512_vm0 = vcmp.eq.s32.totalorder %v435_v2, 0  ;;  %v425_v5 = vld [vmem:[#allocation7 + $0x8] sm:$0xff]  ;;  %v426_v6 = vld [vmem:[#allocation7 + $0x10] sm:$0xff]  ;;  %vm1238_vm1 = vmmov 0   ;;  %v1239_v10 = vmov 0.0  }
  0xfa   : > { %419 = vperm.xlu0 %924, %v415_v3   ;;  %v427_v7 = vld [vmem:[#allocation7 + $0x18] sm:$0xff]  ;;  %v513_v8 = vsel %vm512_vm0, 1, %v1236_v0  ;;  %v789_v9 = vpack.c.bf16 %v425_v5, %v424_v4  ;;  %785 = vmatprep.mubr.msk.f32.mxu0 %vm1238_vm1, %v1239_v10  ;;  %v428_v12 = vld [vmem:[#allocation7 + $0x20] sm:$0xff]  ;;  %v429_v13 = vld [vmem:[#allocation7 + $0x28] sm:$0xff]  ;;  %v417_v19 = vand.u32 127, %v416_v18  ;;  %vm436_vm2 = vcmask 523264  }
  0xfb   : > { %v792_v11 = vpack.c.bf16 %v427_v7, %v426_v6  ;;  %v795_v14 = vpack.c.bf16 %v429_v13, %v428_v12  ;;  %v430_v15 = vld [vmem:[#allocation7 + $0x30] sm:$0xff]  ;;  %v431_v16 = vld [vmem:[#allocation7 + $0x38] sm:$0xff]  ;;  %v434_v23 = vld [vmem:[#allocation8] sm:$0xff]  ;;  %vm528_vm5 = vcmask 261120   ;;  %s757_s30 = sshll.u32 %s1217_s27, 7  ;;  %s414_s16 = scalar_lea.vmem [#allocation14], %s1555_s4 }
  0xfc   : > { %790 = vmatpush3.bf16.msra.mxu0 %v789_v9  ;;  %v798_v17 = vpack.c.bf16 %v431_v16, %v430_v15  ;;  %v752_v24 = vld [vmem:[#allocation10] ss:$0 sm:$0xff]  ;;  %v753_v25 = vld [vmem:[#allocation10 + $0x1] ss:$0 sm:$0xff]  ;;  %v754_v41 = vld [vmem:[#allocation11] ss:$0 sm:$0xff] }
  0xfd   : > { %791 = vmatprep.subr.bf16.mxu0 %v1237_v1  ;;  %v755_v43 = vld [vmem:[#allocation13] ss:$0 sm:$0xff]  ;;  %s575_s5 = sshll.u32 %s414_s16, 4  ;;  %s1679_s22 = sld [smem:[#allocation26_spill]]  ;;  %s1590_s5 = int_to_ptr.vmem [resolvable:$true] %s575_s5 }
  0xfe   : > { %515 = vperm.xlu0 %924, %v513_v8   ;;  %s561_s6 = scalar_lea.sflag [#allocation4], %s1552_s12  ;;  %s1127_s3 = scalar_lea.vmem %s1590_s5, 128 }
  0xff   : > { %p1128_p13 = scmp.ne.s32.totalorder %s1590_s5, %s1127_s3  ;;  %p1680_p0 = scmp.ne.s32.totalorder %s1668_s14, 0 }
 0x100   : > { %793 = vmatpush3.bf16.msra.mxu0 %v792_v11  ;;  %s1240_s27 = smov [#allocation14]  }
 0x101   : > { %794 = vmatprep.subr.bf16.mxu0 %v1237_v1  ;;  %p1129_p7 = pnand %p1128_p13, %p1680_p0  ;;  %s1131_s20 = sshll.u32 %s1240_s27, 4  ;;  %s1132_s20 = int_to_ptr.vmem [resolvable:$false] %s1131_s20 }
 0x102   : > { %s1133_s13 = scalar_lea.vmem %s1132_s20, 256  ;;  %p1134_p2 = scmp.lt.s32.totalorder %s1590_s5, %s1132_s20 }
 0x103   : > { %s1588_s7 = scalar_lea.hbm %s1679_s22, %s757_s30  ;;  %p1130_p5 = pneg %p1129_p7 }
 0x104   : > { %796 = vmatpush3.bf16.msra.mxu0 %v795_v14  ;;  %p1135_p4 = scmp.lt.s32.totalorder %s1133_s13, %s1127_s3 }
 0x105   : > { %797 = vmatprep.subr.bf16.mxu0 %v1237_v1 }
 0x106   : > { %p1136_p11 = por %p1135_p4, %p1134_p2 }
 0x108   : > { %799 = vmatpush3.bf16.msra.mxu0 %v798_v17  ;;  %p1137_p6 = pnand %p1136_p11, %p1130_p5 }
 0x179   : > { %v420_v20 = vpop.permute.xlu0 %419 }
 0x17a   : > { %vm421_vm3 = vcmp.eq.s32.totalorder %v417_v19, %v420_v20 }
 0x17b   : > { %v750_v21 = vsel %vm421_vm3, 1.0, %v1239_v10 }
 0x17c   : > { %786 = vmatmul.mubr.msk.f32.vlgmr.msra.gmra.mrb[0].mxu0 %vm436_vm2, %v750_v21 }
 0x17d   : > { %v516_v22 = vpop.permute.xlu0 %515 }
 0x17e   : > { %vm517_vm4 = vcmp.eq.s32.totalorder %v516_v22, 1 }
 0x17f   : > { %v526_v29 = vsel %vm517_vm4, %v752_v24, %v753_v25 }
 0x24f   : > { %v506_v26 = vpop.f32.mrb[0].mxu0 }
 0x250   : > { %v507_v27 = vadd.f32 %v506_v26, %v434_v23  ;;  %v787_v28 = vpop.f32.mrb[1].mxu0 }
 0x252   : > { %v527_v30 = vadd.f32 %v526_v29, %v507_v27 }
 0x254   : > { %v529_v31 = vsel %vm528_vm5, %v527_v30, 0.0 }
 0x255   : > { %530 = vadd.xlane.f32.xlu1 %v529_v31 }
 0x2e2   : > { %v531_v32 = vpop.xlane.xlu1 %530 }
 0x2e3   : > { %v533_v33 = vmul.f32 0.03125, %v531_v32 }
 0x2e5   : > { %v534_v34 = vsub.f32 %v527_v30, %v533_v33 }
 0x2e7   : > { %v535_v35 = vmul.f32 %v534_v34, %v534_v34 }
 0x2e9   : > { %v536_v36 = vsel %vm528_vm5, %v535_v35, 0.0 }
 0x2ea   : > { %537 = vadd.xlane.f32.xlu1 %v536_v36 }
 0x377   : > { %v538_v37 = vpop.xlane.xlu1 %537 }
 0x378   : > { %v539_v38 = vmul.f32 0.03125, %v538_v37 }
 0x37a   : > { %v540_v39 = vadd.f32 1e-12, %v539_v38 }
 0x37c   : > { %925 = vrsqrt.f32 %v540_v39 }
 0x386   : > { %v926_v40 = vpop.eup %925 }
 0x387   : > { %v542_v42 = vmul.f32 %v926_v40, %v534_v34 }
 0x389   : > { %v550_v44 = vmul.f32 %v754_v41, %v542_v42 }
 0x38b   : > { %v558_v45 = vadd.f32 %v755_v43, %v550_v44 }
 0x38d   : > { %559 = vst.msk [vmem:[%s414_s16] sm:$0xff] %vm528_vm5, %v558_v45 }
 0x38e   : > { %1140 = shalt.err (!%p1137_p6)
}
 0x38f   : > { %s1141_s21 = scalar_lea.hbm %s1588_s7, 128  ;;  %s1145_s15 = scalar_lea.hbm %s1679_s22, 256 }
 0x390   : > { %p1142_p10 = scmp.ne.s32.totalorder %s1588_s7, %s1141_s21  ;;  %p1146_p8 = scmp.lt.u32.totalorder %s1588_s7, %s1679_s22 }
 0x391   : > { %p1147_p3 = scmp.lt.u32.totalorder %s1145_s15, %s1141_s21  ;;  %p1149_p13 = scmp.lt.u32.totalorder %s1141_s21, %s1588_s7 }
 0x392   : > { %p1143_p1 = pnand %p1142_p10, %p1680_p0 }
 0x393   : > { %p1148_p12 = por %p1147_p3, %p1146_p8 }
 0x394   : > { %p1144_p9 = pneg %p1143_p1 }
 0x395   : > { %p1150_p7 = por %p1149_p13, %p1148_p12 }
 0x397   : > { %p1151_p5 = pnand %p1150_p7, %p1144_p9 }
 0x399   : > { %1154 = shalt.err (!%p1151_p5)
}
 0x39a   : > { %824 = dma.vmem_to_hbm [thread:$0]  (%p1680_p0), %s1590_s5, 128, %s1588_s7, %s561_s6  }
 0x39b PF: > { %s587_s11 = sand.u32 1, %s1205_s24   ;;  %p1681_p2 = scmp.ne.s32.totalorder %s1669_s18, 0 }
 0x39c   : > { %p1682_p4 = scmp.ge.s32.totalorder %s1225_s29, 2  ;;  %s588_s23 = scalar_lea.sflag [#allocation4], %s587_s11 }
 0x39e   : > { %p850_p11 = pnand %p1682_p4, %p1681_p2 }
 0x3a0   : > { %1200 = dma.done.wait (!%p850_p11), %s588_s23, 128  }
 0x3a1   : > { %1202 = vsyncadd (!%p850_p11), %s588_s23, 4294967168  ;;  %s28_s29 = sadd.s32 1, %s1225_s29   ;;  %s1683_s24 = smov %s1209_s25 }
 0x3a2   : > { %p25_p6 = scmp.ge.s32.totalorder %s28_s29, 4   ;;  %s1684_s25 = smov %s1213_s26 }
 0x3a3   : > { %s1685_s26 = smov %s1472_s17  ;;  %s1686_s27 = smov %s1221_s28 }
 0x3a4   : > { %s1687_s28 = smov %s1689_s9  ;;  %27 = sbr.rel (!%p25_p6) target bundleno = 17 (0x11), region = 127 }
 0x3ab   :  { %593 = vsyncpa [#allocation3], 1 }
 0x3ac   :  { %595 = vsyncpa [#allocation3 + $0x1], 1 }
 0x3ad   :  { %596 = vsyncpa [#allocation6], 1 }
 0x3ae   :  { %598 = vsyncpa [#allocation6 + $0x1], 1 }
 0x3af   :  { %599 = vsyncpa [#allocation9], 1 }
 0x3b0   :  { %600 = vsyncpa [#allocation12], 1 }
 0x3b1   :  { %601 = vsyncpa [#allocation4], 1 }
 0x3b2   :  { %603 = vsyncpa [#allocation4 + $0x1], 1 }

</bundles_post_ra>
